<compile_context>
chip_gen: v7x
topology: tpu7x:2x2x1
jax: 0.10.0
libtpu: 0.0.40
codegen_flags: <defaults>
</compile_context>

<pallas_src>
import jax
import jax.numpy as jnp
from jax import lax
from jax.experimental import pallas as pl
from jax.experimental.pallas import tpu as pltpu


def _round_up(x, m):
    return ((x + m - 1) // m) * m


def _nsp_kernel(x_ref, w_ref, b_ref, o_ref):
    # x_ref: (TB, H) VMEM   w_ref: (2, H) VMEM   b_ref: (1, 2) VMEM   o_ref: (TB, 2)
    # (TB, H) . (2, H)^T -> (TB, 2), f32 accumulate on the MXU.
    acc = lax.dot_general(
        x_ref[...], w_ref[...],
        dimension_numbers=(((1,), (1,)), ((), ())),
        preferred_element_type=jnp.float32,
    )
    o_ref[...] = (acc + b_ref[...].astype(jnp.float32)).astype(o_ref.dtype)


def _vmem_limit_bytes():
    """Explicit scoped-VMEM limit: ~75% of physical VMEM for this generation."""
    cap = None
    try:
        info = pltpu.get_tpu_info()
        cap = getattr(info, "vmem_capacity_bytes", None)
    except Exception:
        cap = None
    if not cap:
        cap = 64 * 1024 * 1024  # conservative fallback (v7x physical per-TC)
    return max(16 * 1024 * 1024, int(cap) * 3 // 4)


def next_sentence_pred(x, weight, bias, *, max_tile_rows=None):
    """Pallas equivalent of NextSentencePred.forward.

    Args:
      x:      (batch, num_inputs) float32 or bfloat16 (accumulation is f32)
      weight: (2, num_inputs)  -- PyTorch nn.Linear weight layout (kept as-is)
      bias:   (2,)
      max_tile_rows: optional cap on the batch tile (testing / tuning only)
    Returns:
      (batch, 2) logits in x.dtype.
    """
    batch, num_inputs = x.shape
    itemsize = jnp.dtype(x.dtype).itemsize

    # bf16 packs 16 rows per sublane group; f32 packs 8.
    row_align = 16 if itemsize < 4 else 8

    # Explicit scoped-VMEM limit (headroom under physical VMEM on every gen).
    vmem_limit = _vmem_limit_bytes()
    # Two double-buffered X tiles take half the limit; the rest covers W, bias,
    # the lane-padded output tiles and compiler scratch.
    per_buffer_budget = vmem_limit // 4

    rows_fit = (per_buffer_budget // max(1, num_inputs * itemsize))
    rows_fit = max(row_align, (rows_fit // row_align) * row_align)
    tb = rows_fit
    if max_tile_rows is not None:
        tb = min(tb, max(row_align, (max_tile_rows // row_align) * row_align))

    # Force >= 2 grid steps when batch allows, so both v7x TensorCores stream.
    if batch >= 2 * row_align:
        tb = min(tb, _round_up(pl.cdiv(batch, 2), row_align))

    if tb >= batch:
        tb = batch  # single full-extent block, no masking needed
    elif batch % tb != 0:
        # Prefer a tb that divides batch (uniform grid steps); only shrink a
        # little -- otherwise keep the ragged last block (Pallas masks it).
        cand = (tb // row_align) * row_align
        floor = max(row_align, tb // 2)
        while cand >= floor:
            if batch % cand == 0:
                tb = cand
                break
            cand -= row_align

    grid = (pl.cdiv(batch, tb),)

    bias2d = bias.reshape(1, 2)

    flops = 2 * batch * num_inputs * 2 + 2 * batch
    bytes_accessed = (
        batch * num_inputs * itemsize                    # read X (dominant)
        + 2 * num_inputs * jnp.dtype(weight.dtype).itemsize  # read W
        + 2 * jnp.dtype(bias.dtype).itemsize                 # read b
        + batch * 2 * itemsize                               # write logits
    )

    out = pl.pallas_call(
        _nsp_kernel,
        out_shape=jax.ShapeDtypeStruct((batch, 2), x.dtype),
        grid=grid,
        in_specs=[
            pl.BlockSpec((tb, num_inputs), lambda i: (i, 0)),   # X tile (streamed)
            pl.BlockSpec((2, num_inputs), lambda i: (0, 0)),    # W (lane-dense, resident)
            pl.BlockSpec((1, 2), lambda i: (0, 0)),             # bias (1,2) block
        ],
        out_specs=pl.BlockSpec((tb, 2), lambda i: (i, 0)),
        compiler_params=pltpu.CompilerParams(
            dimension_semantics=("parallel",),
            vmem_limit_bytes=vmem_limit,
        ),
        cost_estimate=pl.CostEstimate(
            flops=flops, transcendentals=0, bytes_accessed=bytes_accessed),
    )(x, weight, bias2d)
    return out


if __name__ == "__main__":
    key = jax.random.PRNGKey(0)
    kx, kw, kb, kx2, kx3, kx4 = jax.random.split(key, 6)

    # Small shapes consistent with the module: batch=8, num_inputs(hidden)=32.
    batch, num_inputs = 8, 32
    bound = 1.0 / (num_inputs ** 0.5)
    weight = jax.random.uniform(kw, (2, num_inputs), jnp.float32, -bound, bound)
    bias = jax.random.uniform(kb, (2,), jnp.float32, -bound, bound)
    x = jax.random.normal(kx, (batch, num_inputs), jnp.float32)

    out = jax.block_until_ready(next_sentence_pred(x, weight, bias))
    ref = x @ weight.T + bias
    assert out.shape == (batch, 2)
    assert jnp.allclose(out, ref, atol=1e-5, rtol=1e-5)

    # Tiled/pipelined path with an evenly-dividing grid (grid = 3).
    batch2 = 24
    x2 = jax.random.normal(kx2, (batch2, num_inputs), jnp.float32)
    out2 = jax.block_until_ready(
        next_sentence_pred(x2, weight, bias, max_tile_rows=8))
    ref2 = x2 @ weight.T + bias
    assert out2.shape == (batch2, 2)
    assert jnp.allclose(out2, ref2, atol=1e-5, rtol=1e-5)

    # Ragged last block: batch not a multiple of the tile (exercises masking).
    batch3 = 20
    x3 = jax.random.normal(kx3, (batch3, num_inputs), jnp.float32)
    out3 = jax.block_until_ready(
        next_sentence_pred(x3, weight, bias, max_tile_rows=8))
    ref3 = x3 @ weight.T + bias
    assert out3.shape == (batch3, 2)
    assert jnp.allclose(out3, ref3, atol=1e-5, rtol=1e-5)

    # bf16 inputs (half the HBM bytes; 16-row alignment, >=2 grid steps).
    batch4 = 64
    x4 = jax.random.normal(kx4, (batch4, num_inputs), jnp.float32)
    x4_bf = x4.astype(jnp.bfloat16)
    w_bf = weight.astype(jnp.bfloat16)
    b_bf = bias.astype(jnp.bfloat16)
    out4 = jax.block_until_ready(next_sentence_pred(x4_bf, w_bf, b_bf))
    ref4 = (x4_bf.astype(jnp.float32) @ w_bf.astype(jnp.float32).T
            + b_bf.astype(jnp.float32))
    assert out4.shape == (batch4, 2)
    assert jnp.allclose(out4.astype(jnp.float32), ref4, atol=5e-2, rtol=5e-2)

    print("KERNEL_OK")
</pallas_src>

<mosaic_0001>
module attributes {stable_mosaic.version = 11 : i64} {
  func.func @_nsp_kernel(%arg0: i32, %arg1: memref<8x32xf32, #tpu.memory_space<vmem>>, %arg2: memref<2x32xf32, #tpu.memory_space<vmem>>, %arg3: memref<1x2xf32, #tpu.memory_space<vmem>>, %arg4: memref<8x2xf32, #tpu.memory_space<vmem>>) attributes {dimension_semantics = [#tpu.dimension_semantics<parallel>], iteration_bounds = array<i64: 1>, scalar_prefetch = 0 : i64, scratch_operands = 0 : i64, tpu.core_type = #tpu.core_type<tc>, window_params = [{transform_indices = @transform_0, window_bounds = array<i64: 8, 32>}, {pipeline_mode = #tpu.pipeline_mode<synchronous>, transform_indices = @transform_1, window_bounds = array<i64: 2, 32>}, {pipeline_mode = #tpu.pipeline_mode<synchronous>, transform_indices = @transform_2, window_bounds = array<i64: 1, 2>}, {transform_indices = @transform_3, window_bounds = array<i64: 8, 2>}]} {
    %c0 = arith.constant 0 : index
    %c0_0 = arith.constant 0 : index
    %0 = vector.load %arg1[%c0, %c0_0] : memref<8x32xf32, #tpu.memory_space<vmem>>, vector<8x32xf32>
    %c0_1 = arith.constant 0 : index
    %c0_2 = arith.constant 0 : index
    %1 = vector.load %arg2[%c0_1, %c0_2] : memref<2x32xf32, #tpu.memory_space<vmem>>, vector<2x32xf32>
    %cst = arith.constant dense<0.000000e+00> : vector<8x2xf32>
    %2 = tpu.matmul %0, %1, %cst {dimension_numbers = #tpu.dot_dimension_numbers<[1], [1], [0], [0], [0, 0, 1, 0], [], []>} : vector<8x32xf32>, vector<2x32xf32>, vector<8x2xf32> -> vector<8x2xf32>
    %c0_3 = arith.constant 0 : index
    %c0_4 = arith.constant 0 : index
    %3 = vector.load %arg3[%c0_3, %c0_4] : memref<1x2xf32, #tpu.memory_space<vmem>>, vector<1x2xf32>
    %4 = vector.broadcast %3 : vector<1x2xf32> to vector<8x2xf32>
    %5 = arith.addf %2, %4 : vector<8x2xf32>
    %c0_5 = arith.constant 0 : index
    %c0_6 = arith.constant 0 : index
    %6 = vector.load %arg4[%c0_5, %c0_6] : memref<8x2xf32, #tpu.memory_space<vmem>>, vector<8x2xf32>
    tpu.vector_store %arg4[%c0_5, %c0_6], %5 {strides = array<i32>} : memref<8x2xf32, #tpu.memory_space<vmem>>, vector<8x2xf32>,
    return
  }
  func.func @transform_0(%arg0: i32) -> (i32, i32) {
    %c0_i32 = arith.constant 0 : i32
    %c0_i32_0 = arith.constant 0 : i32
    return %arg0, %c0_i32 : i32, i32
  }
  func.func @transform_1(%arg0: i32) -> (i32, i32) {
    %c0_i32 = arith.constant 0 : i32
    %c0_i32_0 = arith.constant 0 : i32
    %c0_i32_1 = arith.constant 0 : i32
    return %c0_i32, %c0_i32_0 : i32, i32
  }
  func.func @transform_2(%arg0: i32) -> (i32, i32) {
    %c0_i32 = arith.constant 0 : i32
    %c0_i32_0 = arith.constant 0 : i32
    %c0_i32_1 = arith.constant 0 : i32
    return %c0_i32, %c0_i32_0 : i32, i32
  }
  func.func @transform_3(%arg0: i32) -> (i32, i32) {
    %c0_i32 = arith.constant 0 : i32
    %c0_i32_0 = arith.constant 0 : i32
    return %arg0, %c0_i32 : i32, i32
  }
}

</mosaic_0001>

<bundles_post_ra>
// kernel: tpu_custom_call.1
= control target key start
LH: loop header
LB: loop body
LE: loop exit
PB: predicated region body
PF: predicated region fallthrough
CT: control target
= control target key end

     0   :  { %8 = vsyncpa [#allocation3], 0  ;;  %s156_s12 = smov [#allocation2]   ;;  %s200_s0 = inlined_call_operand.hbm [shape: f32[8,32], index: 0, kind: input, shape index: {}]   ;;  %s201_s1 = inlined_call_operand.vmem [shape: f32[2,32], index: 1, kind: input, shape index: {}]   ;;  %s202_s2 = inlined_call_operand.vmem [shape: f32[1,2], index: 2, kind: input, shape index: {}]   ;;  %s203_s3 = inlined_call_operand.vmem [shape: f32[8,2], index: 3, kind: output, shape index: {}]  }
   0x1   :  { %s15_s13 = sshll.u32 %s156_s12, 4  ;;  %s132_s16 = scalar_lea.hbm %s200_s0, 128  ;;  %s16_s13 = int_to_ptr.vmem [resolvable:$true] %s15_s13 }
   0x2   :  { %p133_p0 = scmp.ne.s32.totalorder %s200_s0, %s132_s16  ;;  %p136_p1 = scmp.lt.u32.totalorder %s132_s16, %s200_s0 }
   0x4   :  { %p138_p2 = pnand %p136_p1, %p133_p0 }
   0x6   :  { %141 = shalt.err (!%p138_p2)
}
   0x7   :  { %s142_s21 = scalar_lea.vmem %s16_s13, 128  ;;  %p147_p4 = scmp.lt.s32.totalorder %s16_s13, %s16_s13 }
   0x8   :  { %p143_p3 = scmp.ne.s32.totalorder %s16_s13, %s142_s21  ;;  %p148_p5 = scmp.lt.s32.totalorder %s142_s21, %s142_s21 }
   0xa   :  { %p149_p6 = por %p148_p5, %p147_p4 }
   0xc   :  { %p150_p7 = pnand %p149_p6, %p143_p3 }
   0xe   :  { %153 = shalt.err (!%p150_p7)
}
   0xf   :  { %18 = dma.hbm_to_vmem [thread:$0]  %s200_s0, 128, %s16_s13, [#allocation3]  }
  0x10   :  { %154 = dma.done.wait [#allocation3], 128  }
  0x11   :  { %155 = vsyncadd [#allocation3], 4294967168  ;;  %v157_v0 = vmov 0.0   ;;  %vm158_vm0 = vmmov 0   ;;  %vm35_vm1 = vcmask 261120   ;;  %v26_v2 = vld [vmem:[#allocation2] sm:$0xff] }
  0x12   :  { %124 = vmatprep.subr.mxu0 %v157_v0  ;;  %126 = vmatprep.mubr.msk.f32.mxu0 %vm158_vm0, %v157_v0  ;;  %v27_v1 = vld [vmem:[%s201_s1] sm:$0x3]  ;;  %vm112_vm2 = vcmask 15360  }
  0x13   :  { %125 = vmatpush3.xpose.msk.msra.mxu0 %vm35_vm1, %v27_v1  ;;  %v119_v3 = vld [vmem:[%s202_s2] ss:$0 sm:$0xff] }
  0x16   :  { %127 = vmatmul.mubr.msk.f32.vlgmr.msra.gmra.mrb[0].mxu0 %vm35_vm1, %v26_v2 }
  0xe9   :  { %v108_v4 = vpop.f32.mrb[0].mxu0 }
  0xea   :  { %v109_v5 = vadd.f32 %v119_v3, %v108_v4  ;;  %v128_v6 = vpop.f32.mrb[1].mxu0 }
  0xec   :  { %113 = vst.msk [vmem:[%s203_s3] sm:$0xff] %vm112_vm2, %v109_v5 }
  0xed   :  { %118 = vsyncpa [#allocation3], 1 }

</bundles_post_ra>
